<compile_context>
chip_gen: v7x
topology: tpu7x:2x2x1
jax: 0.10.0
libtpu: 0.0.40
codegen_flags: <defaults>
</compile_context>

<pallas_src>
import jax
import jax.numpy as jnp
from jax.experimental import pallas as pl
from jax.experimental.pallas import tpu as pltpu


MAX_TILE = 512   # dst/src tile cap for the aggregation kernel


def _round_up(x, m):
    return (x + m - 1) // m * m


def _pick_tile(np_padded):
    """Largest tile in {512, 256, 128} dividing Np, keeping >= 2 dst tiles when
    the graph allows it (so the parallel dst axis shards across v7x's 2 TCs)."""
    for cand in (512, 256):
        if np_padded % cand == 0 and np_padded // cand >= 2:
            return cand
    return 128


# --------------------------------------------------------------------------
# Aggregation kernel: tiled (A @ XW) + mean + bias + ReLU
#   grid = (dst tiles, src tiles); src axis is the reduction axis (last).
# --------------------------------------------------------------------------
def gcn_agg_kernel(adj_ref, xw_ref, b_ref, o_ref, acc_ref):
    """
    adj_ref : [T, T]   int8   adjacency tile (dst rows, src cols), entries {0,1}
    xw_ref  : [Np, Fp] bf16   X @ W^T, fully resident; column Fp-1 holds 1.0 per
                              real src node so the in-degree rides the matmul
    b_ref   : [1, Fp]  f32    bias (resident)
    o_ref   : [T, Fp]  f32    output tile
    acc_ref : [T, Fp]  f32    accumulator scratch
    """
    i = pl.program_id(0)
    k = pl.program_id(1)
    tile = adj_ref.shape[0]
    fp = acc_ref.shape[1]

    @pl.when(k == 0)
    def _():
        acc_ref[...] = jnp.zeros_like(acc_ref)

    # int8 -> bf16 widen (cheap, hidden under DMA), native bf16 MXU, f32 acc.
    src = xw_ref[pl.ds(pl.multiple_of(k * tile, tile), tile), :]
    acc_ref[...] += jnp.dot(adj_ref[...].astype(jnp.bfloat16), src,
                            preferred_element_type=jnp.float32)

    @pl.when(k == pl.num_programs(1) - 1)
    def _():
        acc = acc_ref[...]
        deg = acc[:, fp - 1:fp]                 # exact in-degree (ones column)
        has_in = deg > 0.0
        safe_deg = jnp.where(has_in, deg, 1.0)
        # zero-in-degree nodes keep their own transformed feature (DGL semantics)
        xw_dst = xw_ref[pl.ds(pl.multiple_of(i * tile, tile), tile), :].astype(
            jnp.float32)
        agg = jnp.where(has_in, acc / safe_deg, xw_dst)
        o_ref[...] = jnp.maximum(agg + b_ref[...], 0.0)


def gcn_forward(adj, feature, weight, bias):
    """adj: [N, N] (dst, src) with {0,1} entries, feature: [N, Fin],
    weight: [Fout, Fin], bias: [Fout]."""
    N, _ = feature.shape
    Fout = weight.shape[0]

    Np = _round_up(max(N, 8), 128)          # pad nodes to the lane grid only
    tile = _pick_tile(Np)
    Fp = _round_up(Fout + 1, 128)           # lane-dense; +1 reserves the degree column

    # Per-node linear transform: tiny GEMM, let XLA do it (fuses with padding).
    xw = feature.astype(jnp.float32) @ weight.astype(jnp.float32).T   # [N, Fout]

    # Adjacency as int8 in HBM (exact for {0,1}): half the bytes of bf16.
    adj_p = jnp.zeros((Np, Np), jnp.int8).at[:N, :N].set(adj.astype(jnp.int8))

    # Resident XW in bf16; last column = 1.0 per real node -> in-degree via MXU.
    xw_p = jnp.zeros((Np, Fp), jnp.bfloat16)
    xw_p = xw_p.at[:N, :Fout].set(xw.astype(jnp.bfloat16))
    xw_p = xw_p.at[:N, Fp - 1].set(jnp.ones((N,), jnp.bfloat16))

    b_p = jnp.zeros((1, Fp), jnp.float32).at[:, :Fout].set(
        bias.reshape(1, Fout).astype(jnp.float32))

    # Conservative VMEM budget (v7x: 64 MiB physical, 32 MiB scoped default).
    est_bytes = (2 * Np * Fp * 2           # resident XW (bf16), conservative 2x
                 + 2 * tile * tile         # adjacency tiles, int8, double-buffered
                 + 2 * tile * Fp * 4       # output tiles, f32, double-buffered
                 + tile * Fp * 4           # accumulator scratch
                 + 2 * Fp * 4)             # bias
    vmem_limit = int(min(max(2 * est_bytes, 16 * 2**20), 40 * 2**20))

    out_p = pl.pallas_call(
        gcn_agg_kernel,
        out_shape=jax.ShapeDtypeStruct((Np, Fp), jnp.float32),
        grid_spec=pltpu.PrefetchScalarGridSpec(
            num_scalar_prefetch=0,
            grid=(Np // tile, Np // tile),
            in_specs=[
                pl.BlockSpec((tile, tile), lambda i, k: (i, k)),   # adjacency tile
                pl.BlockSpec((Np, Fp), lambda i, k: (0, 0)),       # XW (resident)
                pl.BlockSpec((1, Fp), lambda i, k: (0, 0)),        # bias (resident)
            ],
            out_specs=pl.BlockSpec((tile, Fp), lambda i, k: (i, 0)),
            scratch_shapes=[pltpu.VMEM((tile, Fp), jnp.float32)],
        ),
        compiler_params=pltpu.CompilerParams(
            dimension_semantics=("parallel", "arbitrary"),
            vmem_limit_bytes=vmem_limit),
    )(adj_p, xw_p, b_p)

    return out_p[:N, :Fout]


if __name__ == "__main__":
    key = jax.random.PRNGKey(0)
    k_adj, k_x, k_w, k_b = jax.random.split(key, 4)

    N = 16          # number of graph nodes
    IN_FEATS = 32
    OUT_FEATS = 8

    # deterministic random directed graph, adjacency is [dst, src] with {0,1}
    adj = (jax.random.uniform(k_adj, (N, N)) < 0.3).astype(jnp.float32)
    feature = jax.random.normal(k_x, (N, IN_FEATS), dtype=jnp.float32)

    # nn.Linear(in_feats, out_feats) parameters, deterministic init
    weight = jax.random.normal(k_w, (OUT_FEATS, IN_FEATS), dtype=jnp.float32) * 0.1
    bias = jax.random.normal(k_b, (OUT_FEATS,), dtype=jnp.float32) * 0.1

    out = gcn_forward(adj, feature, weight, bias)
    jax.block_until_ready(out)

    # pure-JAX reference (original formulation, f32 end-to-end)
    deg = jnp.sum(adj, axis=1, keepdims=True)
    agg = jnp.where(deg > 0, (adj @ feature) / jnp.where(deg > 0, deg, 1.0), feature)
    ref = jnp.maximum(agg @ weight.T + bias, 0.0)
    assert out.shape == ref.shape, "shape mismatch vs reference"
    # XW is carried in bf16 through the aggregation MXU path -> ~1e-3 rel error,
    # so the comparison tolerance is loosened accordingly.
    assert jnp.allclose(out, ref, atol=2e-2, rtol=2e-2), "mismatch vs reference"

    print("KERNEL_OK")
</pallas_src>

<mosaic_0001>
module attributes {stable_mosaic.version = 11 : i64} {
  func.func @gcn_agg_kernel(%arg0: i32, %arg1: i32, %arg2: memref<128x128xi8, #tpu.memory_space<vmem>>, %arg3: memref<128x128xbf16, #tpu.memory_space<vmem>>, %arg4: memref<1x128xf32, #tpu.memory_space<vmem>>, %arg5: memref<128x128xf32, #tpu.memory_space<vmem>>, %arg6: memref<128x128xf32, #tpu.memory_space<vmem>>) attributes {dimension_semantics = [#tpu.dimension_semantics<parallel>, #tpu.dimension_semantics<arbitrary>], iteration_bounds = array<i64: 1, 1>, scalar_prefetch = 0 : i64, scratch_operands = 1 : i64, tpu.core_type = #tpu.core_type<tc>, window_params = [{transform_indices = @transform_0, window_bounds = array<i64: 128, 128>}, {pipeline_mode = #tpu.pipeline_mode<synchronous>, transform_indices = @transform_1, window_bounds = array<i64: 128, 128>}, {pipeline_mode = #tpu.pipeline_mode<synchronous>, transform_indices = @transform_2, window_bounds = array<i64: 1, 128>}, {transform_indices = @transform_3, window_bounds = array<i64: 128, 128>}]} {
    %c0_i32 = arith.constant 0 : i32
    %0 = arith.cmpi eq, %arg1, %c0_i32 : i32
    %1 = arith.extui %0 : i1 to i32
    %c0_i32_0 = arith.constant 0 : i32
    %2 = arith.cmpi ne, %1, %c0_i32_0 : i32
    scf.if %2 {
      %cst_9 = arith.constant 0.000000e+00 : f32
      %16 = vector.broadcast %cst_9 : f32 to vector<128x128xf32>
      %c0_10 = arith.constant 0 : index
      %c0_11 = arith.constant 0 : index
      %17 = vector.load %arg6[%c0_10, %c0_11] : memref<128x128xf32, #tpu.memory_space<vmem>>, vector<128x128xf32>
      tpu.vector_store %arg6[%c0_10, %c0_11], %16 {strides = array<i32>} : memref<128x128xf32, #tpu.memory_space<vmem>>, vector<128x128xf32>,
    } else {
    }
    %c128_i32 = arith.constant 128 : i32
    %3 = arith.muli %arg1, %c128_i32 : i32
    %4 = tpu.assume_multiple %3, 128 : i32
    %5 = arith.index_cast %4 : i32 to index
    %c0 = arith.constant 0 : index
    %6 = vector.load %arg3[%5, %c0] : memref<128x128xbf16, #tpu.memory_space<vmem>>, vector<128x128xbf16>
    %c0_1 = arith.constant 0 : index
    %c0_2 = arith.constant 0 : index
    %7 = vector.load %arg6[%c0_1, %c0_2] : memref<128x128xf32, #tpu.memory_space<vmem>>, vector<128x128xf32>
    %c0_3 = arith.constant 0 : index
    %c0_4 = arith.constant 0 : index
    %8 = vector.load %arg2[%c0_3, %c0_4] : memref<128x128xi8, #tpu.memory_space<vmem>>, vector<128x128xi8>
    %9 = arith.sitofp %8 : vector<128x128xi8> to vector<128x128xbf16>
    %cst = arith.constant dense<0.000000e+00> : vector<128x128xf32>
    %10 = tpu.matmul %9, %6, %cst {dimension_numbers = #tpu.dot_dimension_numbers<[1], [0], [0], [1], [0, 0, 1, 1], [], []>} : vector<128x128xbf16>, vector<128x128xbf16>, vector<128x128xf32> -> vector<128x128xf32>
    %11 = arith.addf %7, %10 : vector<128x128xf32>
    %c0_5 = arith.constant 0 : index
    %c0_6 = arith.constant 0 : index
    %12 = vector.load %arg6[%c0_5, %c0_6] : memref<128x128xf32, #tpu.memory_space<vmem>>, vector<128x128xf32>
    tpu.vector_store %arg6[%c0_5, %c0_6], %11 {strides = array<i32>} : memref<128x128xf32, #tpu.memory_space<vmem>>, vector<128x128xf32>,
    %c0_i32_7 = arith.constant 0 : i32
    %13 = arith.cmpi eq, %arg1, %c0_i32_7 : i32
    %14 = arith.extui %13 : i1 to i32
    %c0_i32_8 = arith.constant 0 : i32
    %15 = arith.cmpi ne, %14, %c0_i32_8 : i32
    scf.if %15 {
      %c0_9 = arith.constant 0 : index
      %c0_10 = arith.constant 0 : index
      %16 = vector.load %arg6[%c0_9, %c0_10] : memref<128x128xf32, #tpu.memory_space<vmem>>, vector<128x128xf32>
      %17 = vector.extract_strided_slice %16 {offsets = [0, 127], sizes = [128, 1], strides = [1, 1]} : vector<128x128xf32> to vector<128x1xf32>
      %cst_11 = arith.constant 0.000000e+00 : f32
      %18 = vector.broadcast %cst_11 : f32 to vector<128x1xf32>
      %19 = arith.cmpf ogt, %17, %18 : vector<128x1xf32>
      %cst_12 = arith.constant 1.000000e+00 : f32
      %20 = vector.broadcast %cst_12 : f32 to vector<128x1xf32>
      %21 = arith.select %19, %17, %20 : vector<128x1xi1>, vector<128x1xf32>
      %c128_i32_13 = arith.constant 128 : i32
      %22 = arith.muli %arg0, %c128_i32_13 : i32
      %23 = tpu.assume_multiple %22, 128 : i32
      %24 = arith.index_cast %23 : i32 to index
      %c0_14 = arith.constant 0 : index
      %25 = vector.load %arg3[%24, %c0_14] : memref<128x128xbf16, #tpu.memory_space<vmem>>, vector<128x128xbf16>
      %26 = arith.extf %25 : vector<128x128xbf16> to vector<128x128xf32>
      %27 = vector.broadcast %21 : vector<128x1xf32> to vector<128x128xf32>
      %28 = arith.divf %16, %27 : vector<128x128xf32>
      %29 = vector.shape_cast %19 : vector<128x1xi1> to vector<128x1xi1>
      %30 = vector.broadcast %29 : vector<128x1xi1> to vector<128x128xi1>
      %31 = arith.select %30, %28, %26 : vector<128x128xi1>, vector<128x128xf32>
      %c0_15 = arith.constant 0 : index
      %c0_16 = arith.constant 0 : index
      %32 = vector.load %arg4[%c0_15, %c0_16] : memref<1x128xf32, #tpu.memory_space<vmem>>, vector<1x128xf32>
      %33 = vector.broadcast %32 : vector<1x128xf32> to vector<128x128xf32>
      %34 = arith.addf %31, %33 : vector<128x128xf32>
      %cst_17 = arith.constant 0.000000e+00 : f32
      %35 = vector.broadcast %cst_17 : f32 to vector<128x128xf32>
      %36 = arith.maximumf %34, %35 : vector<128x128xf32>
      %c0_18 = arith.constant 0 : index
      %c0_19 = arith.constant 0 : index
      %37 = vector.load %arg5[%c0_18, %c0_19] : memref<128x128xf32, #tpu.memory_space<vmem>>, vector<128x128xf32>
      tpu.vector_store %arg5[%c0_18, %c0_19], %36 {strides = array<i32>} : memref<128x128xf32, #tpu.memory_space<vmem>>, vector<128x128xf32>,
    } else {
    }
    return
  }
  func.func @transform_0(%arg0: i32, %arg1: i32) -> (i32, i32) {
    %c0_i32 = arith.constant 0 : i32
    return %arg0, %arg1 : i32, i32
  }
  func.func @transform_1(%arg0: i32, %arg1: i32) -> (i32, i32) {
    %c0_i32 = arith.constant 0 : i32
    %c0_i32_0 = arith.constant 0 : i32
    %c0_i32_1 = arith.constant 0 : i32
    return %c0_i32, %c0_i32_0 : i32, i32
  }
  func.func @transform_2(%arg0: i32, %arg1: i32) -> (i32, i32) {
    %c0_i32 = arith.constant 0 : i32
    %c0_i32_0 = arith.constant 0 : i32
    %c0_i32_1 = arith.constant 0 : i32
    return %c0_i32, %c0_i32_0 : i32, i32
  }
  func.func @transform_3(%arg0: i32, %arg1: i32) -> (i32, i32) {
    %c0_i32 = arith.constant 0 : i32
    %c0_i32_0 = arith.constant 0 : i32
    return %arg0, %c0_i32 : i32, i32
  }
}

</mosaic_0001>

<bundles_post_ra>
// kernel: tpu_custom_call.1
= control target key start
LH: loop header
LB: loop body
LE: loop exit
PB: predicated region body
PF: predicated region fallthrough
CT: control target
= control target key end

     0   :  { %8 = vsyncpa [#allocation4], 0  ;;  %s1106_s0 = inlined_call_operand.hbm [shape: s8[128,128], index: 0, kind: input, shape index: {}]   ;;  %s1107_s1 = inlined_call_operand.hbm [shape: bf16[128,128], index: 1, kind: input, shape index: {}]   ;;  %s1108_s2 = inlined_call_operand.vmem [shape: f32[1,128], index: 2, kind: input, shape index: {}]   ;;  %s1109_s3 = inlined_call_operand.hbm [shape: f32[128,128], index: 3, kind: output, shape index: {}]  }
   0x1   :  { %9 = vsyncpa [#allocation7], 0 }
   0x2   :  { %10 = vsyncpa [#allocation5], 0  ;;  %s898_s12 = smov [#allocation3]   ;;  %s826_s16 = scalar_lea.hbm %s1106_s0, 512 }
   0x3   :  { %s16_s13 = sshll.u32 %s898_s12, 4  ;;  %p827_p0 = scmp.ne.s32.totalorder %s1106_s0, %s826_s16  ;;  %s17_s13 = int_to_ptr.vmem [resolvable:$true] %s16_s13 }
   0x4   :  { %p830_p1 = scmp.lt.u32.totalorder %s826_s16, %s1106_s0 }
   0x6   :  { %p832_p2 = pnand %p830_p1, %p827_p0 }
   0x8   :  { %835 = shalt.err (!%p832_p2)
}
   0x9   :  { %s836_s21 = scalar_lea.vmem %s17_s13, 512  ;;  %p841_p4 = scmp.lt.s32.totalorder %s17_s13, %s17_s13 }
   0xa   :  { %p837_p3 = scmp.ne.s32.totalorder %s17_s13, %s836_s21  ;;  %p842_p5 = scmp.lt.s32.totalorder %s836_s21, %s836_s21 }
   0xc   :  { %p843_p6 = por %p842_p5, %p841_p4 }
   0xe   :  { %p844_p7 = pnand %p843_p6, %p837_p3 }
  0x10   :  { %847 = shalt.err (!%p844_p7)
}
  0x11   :  { %s899_s22 = smov 128   ;;  %s900_s23 = smov 8  }
  0x12   :  { %22 = dma.hbm_to_vmem [thread:$0]  %s1106_s0, 512, %s17_s13, [#allocation4], %s899_s22, %s899_s22, %s900_s23  }
  0x13   :  { %s901_s26 = smov [#allocation6]   ;;  %s848_s30 = scalar_lea.hbm %s1107_s1, 1024 }
  0x14   :  { %s28_s27 = sshll.u32 %s901_s26, 4  ;;  %p849_p8 = scmp.ne.s32.totalorder %s1107_s1, %s848_s30  ;;  %s29_s27 = int_to_ptr.vmem [resolvable:$true] %s28_s27 }
  0x15   :  { %p852_p9 = scmp.lt.u32.totalorder %s848_s30, %s1107_s1 }
  0x17   :  { %p854_p10 = pnand %p852_p9, %p849_p8 }
  0x19   :  { %857 = shalt.err (!%p854_p10)
}
  0x1a   :  { %s858_s8 = scalar_lea.vmem %s29_s27, 1024  ;;  %p863_p12 = scmp.lt.s32.totalorder %s29_s27, %s29_s27 }
  0x1b   :  { %p859_p11 = scmp.ne.s32.totalorder %s29_s27, %s858_s8  ;;  %p864_p13 = scmp.lt.s32.totalorder %s858_s8, %s858_s8 }
  0x1d   :  { %p865_p0 = por %p864_p13, %p863_p12 }
  0x1f   :  { %p866_p1 = pnand %p865_p0, %p859_p11 }
  0x21   :  { %869 = shalt.err (!%p866_p1)
}
  0x22   :  { %s902_s0 = smov 64   ;;  %s903_s9 = smov 4  }
  0x23   :  { %34 = dma.hbm_to_vmem [thread:$0]  %s1107_s1, 1024, %s29_s27, [#allocation7], %s902_s0, %s902_s0, %s903_s9  }
  0x24   :  { %892 = dma.done.wait [#allocation4], 512  }
  0x25   :  { %893 = vsyncadd [#allocation4], 4294966784 }
  0x26   :  { %894 = dma.done.wait [#allocation7], 1024  }
  0x27   :  { %895 = vsyncadd [#allocation7], 4294966272  ;;  %v786_v0 = vld [vmem:[#allocation6] sm:$0xff]   ;;  %v787_v1 = vld [vmem:[#allocation6 + $0x8] sm:$0xff]   ;;  %v904_v20 = vmov 127   ;;  %v905_v31 = vmov 0  }
  0x28   :  { %727 = vmatprep.subr.bf16.mxu0 %v786_v0  ;;  %759 = vmatprep.subr.bf16.mxu1 %v786_v0  ;;  %v788_v2 = vld [vmem:[#allocation6 + $0x10] sm:$0xff]   ;;  %v789_v3 = vld [vmem:[#allocation6 + $0x18] sm:$0xff]   ;;  %v101_v4 = vld [vmem:[#allocation3] sm:$0xff] }
  0x29   :  { %728 = vmatpush3.bf16.msra.mxu0 %v786_v0  ;;  %767 = vmatpush3.bf16.msra.mxu1 %v786_v0  ;;  %v103_v5 = vld [vmem:[#allocation3 + $0x10] sm:$0xff]  ;;  %v105_v6 = vunpack.c.l.s8.bf16 %v101_v4  ;;  %v790_v8 = vld [vmem:[#allocation6 + $0x20] sm:$0xff]   ;;  %v791_v9 = vld [vmem:[#allocation6 + $0x28] sm:$0xff]   ;;  %v106_v14 = vunpack.c.h.s8.bf16 %v101_v4 }
  0x2a   :  { %729 = vmatprep.subr.bf16.mxu0 %v787_v1  ;;  %760 = vmatprep.subr.bf16.mxu1 %v787_v1  ;;  %v109_v7 = vunpack.c.l.s8.bf16 %v103_v5  ;;  %v792_v10 = vld [vmem:[#allocation6 + $0x30] sm:$0xff]   ;;  %v793_v11 = vld [vmem:[#allocation6 + $0x38] sm:$0xff]   ;;  %v102_v12 = vld [vmem:[#allocation3 + $0x8] sm:$0xff]  ;;  %v110_v15 = vunpack.c.h.s8.bf16 %v103_v5 }
  0x2b   :  { %743 = vmatprep.mubr.bf16.mxu0 %v105_v6  ;;  %v104_v13 = vld [vmem:[#allocation3 + $0x18] sm:$0xff]  ;;  %v107_v16 = vunpack.c.l.s8.bf16 %v102_v12  ;;  %v108_v18 = vunpack.c.h.s8.bf16 %v102_v12  ;;  %785 = vset.pattern.permute.xlu0 %v904_v20 }
  0x2c   :  { %751 = vmatprep.mubr.bf16.mxu1 %v109_v7  ;;  %v111_v17 = vunpack.c.l.s8.bf16 %v104_v13  ;;  %v112_v19 = vunpack.c.h.s8.bf16 %v104_v13  ;;  %784 = vset.pattern.permute.xlu1 %v904_v20 }
  0x2d   :  { %730 = vmatpush3.bf16.msra.mxu0 %v787_v1  ;;  %768 = vmatpush3.bf16.msra.mxu1 %v787_v1 }
  0x2e   :  { %731 = vmatprep.subr.bf16.mxu0 %v788_v2  ;;  %761 = vmatprep.subr.bf16.mxu1 %v788_v2 }
  0x31   :  { %732 = vmatpush3.bf16.msra.mxu0 %v788_v2  ;;  %769 = vmatpush3.bf16.msra.mxu1 %v788_v2 }
  0x32   :  { %733 = vmatprep.subr.bf16.mxu0 %v789_v3  ;;  %762 = vmatprep.subr.bf16.mxu1 %v789_v3 }
  0x35   :  { %734 = vmatpush3.bf16.msra.mxu0 %v789_v3  ;;  %770 = vmatpush3.bf16.msra.mxu1 %v789_v3 }
  0x36   :  { %735 = vmatprep.subr.bf16.mxu0 %v790_v8  ;;  %763 = vmatprep.subr.bf16.mxu1 %v790_v8 }
  0x39   :  { %736 = vmatpush3.bf16.msra.mxu0 %v790_v8  ;;  %771 = vmatpush3.bf16.msra.mxu1 %v790_v8 }
  0x3a   :  { %737 = vmatprep.subr.bf16.mxu0 %v791_v9  ;;  %764 = vmatprep.subr.bf16.mxu1 %v791_v9 }
  0x3d   :  { %738 = vmatpush3.bf16.msra.mxu0 %v791_v9  ;;  %772 = vmatpush3.bf16.msra.mxu1 %v791_v9 }
  0x3e   :  { %739 = vmatprep.subr.bf16.mxu0 %v792_v10  ;;  %765 = vmatprep.subr.bf16.mxu1 %v792_v10 }
  0x41   :  { %740 = vmatpush3.bf16.msra.mxu0 %v792_v10  ;;  %773 = vmatpush3.bf16.msra.mxu1 %v792_v10  ;;  %v708_v10 = vld [vmem:[#allocation6 + $0x28] sm:$0xff]  }
  0x42   :  { %741 = vmatprep.subr.bf16.mxu0 %v793_v11  ;;  %766 = vmatprep.subr.bf16.mxu1 %v793_v11 }
  0x45   :  { %742 = vmatpush3.bf16.msra.mxu0 %v793_v11  ;;  %774 = vmatpush3.bf16.msra.mxu1 %v793_v11  ;;  %v704_v11 = vld [vmem:[#allocation6 + $0x8] sm:$0xff]  }
  0x48   :  { %744 = vmatmul.mubr.bf16.vlgmr.msra.gmra.mrb[0].mxu0 %v106_v14  ;;  %752 = vmatmul.mubr.bf16.vlgmr.msra.gmra.mrb[0].mxu1 %v110_v15  ;;  %v694_v14 = vunpack.c.l.bf16 %v708_v10 }
  0x49   :  { %747 = vmatprep.mubr.bf16.mxu0 %v107_v16  ;;  %755 = vmatprep.mubr.bf16.mxu1 %v111_v17  ;;  %v678_v16 = vunpack.c.l.bf16 %v704_v11 }
  0x50   :  { %748 = vmatmul.mubr.bf16.gmra.mrb[4].mxu0 %v108_v18  ;;  %756 = vmatmul.mubr.bf16.gmra.mrb[4].mxu1 %v112_v19  ;;  %v1057_v18 = vld [vmem:[%s1108_s2] ss:$0 sm:$0xff]  ;;  %s906_s2 = smov [#allocation8]  }
  0x51   :  { %s646_s13 = sshll.u32 %s906_s2, 4  ;;  %s647_s13 = int_to_ptr.vmem [resolvable:$true] %s646_s13 }
  0x52   :  { %s870_s14 = scalar_lea.vmem %s647_s13, 2048  ;;  %p875_p3 = scmp.lt.s32.totalorder %s647_s13, %s647_s13 }
  0x53   :  { %p871_p2 = scmp.ne.s32.totalorder %s647_s13, %s870_s14  ;;  %p876_p4 = scmp.lt.s32.totalorder %s870_s14, %s870_s14 }
  0x55   :  { %p877_p5 = por %p876_p4, %p875_p3 }
  0x57   :  { %p878_p6 = pnand %p877_p5, %p871_p2 }
 0x11b   :  { %v954_v21 = vpop.f32.mrb[0].mxu0  ;;  %v956_v22 = vpop.f32.mrb[0].mxu1 }
 0x11c   :  { %v958_v23 = vpop.f32.mrb[1].mxu0  ;;  %v960_v24 = vpop.f32.mrb[1].mxu1  ;;  %vm319_vm0 = vcmp.gt.f32.partialorder %v956_v22, 0.0  ;;  %vm311_vm1 = vcmp.gt.f32.partialorder %v954_v21, 0.0 }
 0x11d   :  { %v964_v25 = vpop.f32.mrb[2].mxu0  ;;  %v966_v26 = vpop.f32.mrb[2].mxu1  ;;  %v335_v27 = vsel %vm319_vm0, %v956_v22, 1.0  ;;  %v327_v28 = vsel %vm311_vm1, %v954_v21, 1.0  ;;  %v492_v32 = vsel %vm311_vm1, 1, %v905_v31  ;;  %v500_v38 = vsel %vm319_vm0, 1, %v905_v31 }
 0x11e   :  { %430 = vperm.xlu0 %785, %v335_v27   ;;  %v972_v29 = vpop.f32.mrb[3].mxu1  ;;  %390 = vperm.xlu1 %784, %v327_v28   ;;  %v974_v30 = vpop.f32.mrb[3].mxu0  ;;  %vm312_vm2 = vcmp.gt.f32.partialorder %v964_v25, 0.0  ;;  %vm320_vm3 = vcmp.gt.f32.partialorder %v966_v26, 0.0  ;;  %vm309_vm4 = vcmp.gt.f32.partialorder %v958_v23, 0.0  ;;  %vm317_vm5 = vcmp.gt.f32.partialorder %v960_v24, 0.0 }
 0x11f   :  { %v328_v33 = vsel %vm312_vm2, %v964_v25, 1.0  ;;  %v336_v39 = vsel %vm320_vm3, %v966_v26, 1.0  ;;  %v325_v44 = vsel %vm309_vm4, %v958_v23, 1.0  ;;  %v493_v45 = vsel %vm312_vm2, 1, %v905_v31 }
 0x120   :  { %v333_v46 = vsel %vm317_vm5, %v960_v24, 1.0  ;;  %v501_v47 = vsel %vm320_vm3, 1, %v905_v31  ;;  %vm318_vm6 = vcmp.gt.f32.partialorder %v972_v29, 0.0  ;;  %v490_v48 = vsel %vm309_vm4, 1, %v905_v31 }
 0x121   :  { %v334_v49 = vsel %vm318_vm6, %v972_v29, 1.0  ;;  %vm310_vm7 = vcmp.gt.f32.partialorder %v974_v30, 0.0  ;;  %v498_v50 = vsel %vm317_vm5, 1, %v905_v31  ;;  %v499_v52 = vsel %vm318_vm6, 1, %v905_v31 }
 0x122   :  { %513 = vperm.xlu0 %785, %v492_v32   ;;  %395 = vperm.xlu1 %784, %v328_v33   ;;  %v491_v51 = vsel %vm310_vm7, 1, %v905_v31  ;;  %v326_v53 = vsel %vm310_vm7, %v974_v30, 1.0  ;;  %v679_v32 = vunpack.c.h.bf16 %v704_v11 }
 0x123   :  { %v982_v34 = vpop.f32.mrb[4].mxu0  ;;  %v984_v35 = vpop.f32.mrb[4].mxu1 }
 0x124   :  { %v986_v36 = vpop.f32.mrb[5].mxu0  ;;  %v988_v37 = vpop.f32.mrb[5].mxu1  ;;  %vm315_vm8 = vcmp.gt.f32.partialorder %v982_v34, 0.0  ;;  %vm323_vm10 = vcmp.gt.f32.partialorder %v984_v35, 0.0 }
 0x125   :  { %v996_v40 = vpop.f32.mrb[6].mxu0  ;;  %v998_v41 = vpop.f32.mrb[6].mxu1  ;;  %v331_v54 = vsel %vm315_vm8, %v982_v34, 1.0  ;;  %v339_v56 = vsel %vm323_vm10, %v984_v35, 1.0  ;;  %v496_v58 = vsel %vm315_vm8, 1, %v905_v31  ;;  %vm313_vm13 = vcmp.gt.f32.partialorder %v986_v36, 0.0 }
 0x126   :  { %537 = vperm.xlu0 %785, %v500_v38   ;;  %435 = vperm.xlu1 %784, %v336_v39   ;;  %v1001_v42 = vpop.f32.mrb[7].mxu0  ;;  %v1003_v43 = vpop.f32.mrb[7].mxu1  ;;  %vm316_vm9 = vcmp.gt.f32.partialorder %v996_v40, 0.0  ;;  %vm324_vm11 = vcmp.gt.f32.partialorder %v998_v41, 0.0  ;;  %v329_v60 = vsel %vm313_vm13, %v986_v36, 1.0  ;;  %vm321_vm15 = vcmp.gt.f32.partialorder %v988_v37, 0.0 }
 0x127   :  { %v332_v55 = vsel %vm316_vm9, %v996_v40, 1.0  ;;  %v340_v57 = vsel %vm324_vm11, %v998_v41, 1.0  ;;  %v497_v59 = vsel %vm316_vm9, 1, %v905_v31  ;;  %vm314_vm12 = vcmp.gt.f32.partialorder %v1001_v42, 0.0 }
 0x128   :  { %v330_v61 = vsel %vm314_vm12, %v1001_v42, 1.0  ;;  %vm322_vm14 = vcmp.gt.f32.partialorder %v1003_v43, 0.0  ;;  %v337_v62 = vsel %vm321_vm15, %v988_v37, 1.0  ;;  %v494_v0 = vsel %vm313_vm13, 1, %v905_v31 }
 0x129   :  { %v338_v63 = vsel %vm322_vm14, %v1003_v43, 1.0  ;;  %v495_v1 = vsel %vm314_vm12, 1, %v905_v31  ;;  %v502_v2 = vsel %vm321_vm15, 1, %v905_v31  ;;  %v503_v3 = vsel %vm322_vm14, 1, %v905_v31 }
 0x12a   :  { %380 = vperm.xlu0 %785, %v325_v44   ;;  %516 = vperm.xlu1 %784, %v493_v45   ;;  %v504_v4 = vsel %vm323_vm10, 1, %v905_v31  ;;  %v505_v5 = vsel %vm324_vm11, 1, %v905_v31 }
 0x12e   :  { %420 = vperm.xlu0 %785, %v333_v46   ;;  %540 = vperm.xlu1 %784, %v501_v47  }
 0x132   :  { %507 = vperm.xlu0 %785, %v490_v48   ;;  %425 = vperm.xlu1 %784, %v334_v49   ;;  %v695_v49 = vunpack.c.h.bf16 %v708_v10 }
 0x136   :  { %531 = vperm.xlu0 %785, %v498_v50   ;;  %510 = vperm.xlu1 %784, %v491_v51  }
 0x13a   :  { %534 = vperm.xlu1 %784, %v499_v52   ;;  %385 = vperm.xlu0 %785, %v326_v53   ;;  %v673_v52 = vld [vmem:[#allocation6] sm:$0xff]  }
 0x13e   :  { %410 = vperm.xlu0 %785, %v331_v54   ;;  %415 = vperm.xlu1 %784, %v332_v55  }
 0x142   :  { %450 = vperm.xlu0 %785, %v339_v56   ;;  %455 = vperm.xlu1 %784, %v340_v57   ;;  %v674_v57 = vunpack.c.l.bf16 %v673_v52 }
 0x146   :  { %525 = vperm.xlu0 %785, %v496_v58   ;;  %528 = vperm.xlu1 %784, %v497_v59  }
 0x14a   :  { %400 = vperm.xlu0 %785, %v329_v60   ;;  %405 = vperm.xlu1 %784, %v330_v61   ;;  %v707_v60 = vld [vmem:[#allocation6 + $0x20] sm:$0xff]  }
 0x14e   :  { %440 = vperm.xlu0 %785, %v337_v62   ;;  %445 = vperm.xlu1 %784, %v338_v63  }
 0x152   :  { %519 = vperm.xlu0 %785, %v494_v0   ;;  %522 = vperm.xlu1 %784, %v495_v1  }
 0x156   :  { %543 = vperm.xlu0 %785, %v502_v2   ;;  %546 = vperm.xlu1 %784, %v503_v3  }
 0x15a   :  { %549 = vperm.xlu0 %785, %v504_v4   ;;  %552 = vperm.xlu1 %784, %v505_v5  }
 0x19d   :  { %v431_v6 = vpop.permute.xlu0 %430  ;;  %v391_v7 = vpop.permute.xlu1 %390 }
 0x19e   :  { %794 = vrcp.f32 %v431_v6 }
 0x19f   :  { %796 = vrcp.f32 %v391_v7 }
 0x1a1   :  { %v514_v8 = vpop.permute.xlu0 %513  ;;  %v396_v9 = vpop.permute.xlu1 %395 }
 0x1a2   :  { %798 = vrcp.f32 %v396_v9  ;;  %vm556_vm1 = vcmp.eq.s32.totalorder %v514_v8, 1  ;;  %v691_v9 = vunpack.c.h.bf16 %v707_v60 }
 0x1a5   :  { %v538_v12 = vpop.permute.xlu0 %537  ;;  %v436_v13 = vpop.permute.xlu1 %435 }
 0x1a6   :  { %800 = vrcp.f32 %v436_v13  ;;  %vm564_vm0 = vcmp.eq.s32.totalorder %v538_v12, 1 }
 0x1a8   :  { %v795_v15 = vpop.eup %794 }
 0x1a9   :  { %v797_v17 = vpop.eup %796  ;;  %v479_v19 = vmul.f32 %v795_v15, %v956_v22  ;;  %v381_v20 = vpop.permute.xlu0 %380 }
 0x1aa   :  { %v517_v27 = vpop.permute.xlu1 %516  ;;  %v463_v28 = vmul.f32 %v797_v17, %v954_v21  ;;  %802 = vrcp.f32 %v381_v20  ;;  %v675_v20 = vunpack.c.h.bf16 %v673_v52 }
 0x1ab   :  { %v580_v31 = vsel %vm564_vm0, %v479_v19, %v694_v14  ;;  %vm557_vm2 = vcmp.eq.s32.totalorder %v517_v27, 1 }
 0x1ac   :  { %v799_v33 = vpop.eup %798  ;;  %v572_v38 = vsel %vm556_vm1, %v463_v28, %v678_v16  ;;  %v603_v39 = vadd.f32 %v1057_v18, %v580_v31  ;;  %v706_v28 = vld [vmem:[#allocation6 + $0x18] sm:$0xff]  }
 0x1ad   :  { %v595_v44 = vadd.f32 %v1057_v18, %v572_v38  ;;  %v465_v45 = vmul.f32 %v799_v33, %v964_v25  ;;  %v421_v46 = vpop.permute.xlu0 %420  ;;  %v686_v38 = vunpack.c.l.bf16 %v706_v28 }
 0x1ae   :  { %v541_v47 = vpop.permute.xlu1 %540  ;;  %v619_v22 = vmax.f32 %v603_v39, 0.0  ;;  %804 = vrcp.f32 %v421_v46 }
 0x1af   :  { %v611_v48 = vmax.f32 %v595_v44, 0.0  ;;  %v573_v21 = vsel %vm557_vm2, %v465_v45, %v679_v32  ;;  %vm565_vm3 = vcmp.eq.s32.totalorder %v541_v47, 1  ;;  %v687_v45 = vunpack.c.h.bf16 %v706_v28 }
 0x1b0   :  { %v801_v50 = vpop.eup %800  ;;  %635 = vst [vmem:[#allocation8 + $0x50] sm:$0xff] %v619_v22  ;;  %v596_v51 = vadd.f32 %v1057_v18, %v573_v21 }
 0x1b1   :  { %627 = vst [vmem:[#allocation8 + $0x10] sm:$0xff] %v611_v48  ;;  %v481_v53 = vmul.f32 %v801_v50, %v966_v26  ;;  %v508_v54 = vpop.permute.xlu0 %507  ;;  %v690_v26 = vunpack.c.l.bf16 %v707_v60  ;;  %v709_v60 = vld [vmem:[#allocation6 + $0x30] sm:$0xff]  }
 0x1b2   :  { %v426_v55 = vpop.permute.xlu1 %425  ;;  %v612_v56 = vmax.f32 %v596_v51, 0.0  ;;  %vm554_vm4 = vcmp.eq.s32.totalorder %v508_v54, 1 }
 0x1b3   :  { %806 = vrcp.f32 %v426_v55  ;;  %v581_v25 = vsel %vm565_vm3, %v481_v53, %v695_v49 }
 0x1b4   :  { %v803_v58 = vpop.eup %802  ;;  %628 = vst [vmem:[#allocation8 + $0x18] sm:$0xff] %v612_v56  ;;  %v604_v59 = vadd.f32 %v1057_v18, %v581_v25  ;;  %v705_v56 = vld [vmem:[#allocation6 + $0x10] sm:$0xff]  }
 0x1b5   :  { %v459_v61 = vmul.f32 %v803_v58, %v958_v23  ;;  %v532_v62 = vpop.permute.xlu0 %531 }
 0x1b6   :  { %v511_v63 = vpop.permute.xlu1 %510  ;;  %v620_v0 = vmax.f32 %v604_v59, 0.0  ;;  %vm562_vm5 = vcmp.eq.s32.totalorder %v532_v62, 1  ;;  %v682_v59 = vunpack.c.l.bf16 %v705_v56  ;;  %v683_v62 = vunpack.c.h.bf16 %v705_v56 }
 0x1b7   :  { %v570_v1 = vsel %vm554_vm4, %v459_v61, %v674_v57  ;;  %vm555_vm7 = vcmp.eq.s32.totalorder %v511_v63, 1  ;;  %v710_v63 = vld [vmem:[#allocation6 + $0x38] sm:$0xff]  }
 0x1b8   :  { %v805_v2 = vpop.eup %804  ;;  %636 = vst [vmem:[#allocation8 + $0x58] sm:$0xff] %v620_v0  ;;  %v593_v3 = vadd.f32 %v1057_v18, %v570_v1 }
 0x1b9   :  { %v475_v4 = vmul.f32 %v805_v2, %v960_v24  ;;  %v386_v6 = vpop.permute.xlu0 %385 }
 0x1ba   :  { %v535_v5 = vpop.permute.xlu1 %534  ;;  %v609_v7 = vmax.f32 %v593_v3, 0.0  ;;  %808 = vrcp.f32 %v386_v6 }
 0x1bb   :  { %v578_v8 = vsel %vm562_vm5, %v475_v4, %v690_v26  ;;  %vm563_vm6 = vcmp.eq.s32.totalorder %v535_v5, 1  ;;  %v698_v4 = vunpack.c.l.bf16 %v709_v60  ;;  %v699_v5 = vunpack.c.h.bf16 %v709_v60 }
 0x1bc   :  { %625 = vst [vmem:[#allocation8] sm:$0xff] %v609_v7  ;;  %v601_v10 = vadd.f32 %v1057_v18, %v578_v8  ;;  %v702_v7 = vunpack.c.l.bf16 %v710_v63  ;;  %v703_v8 = vunpack.c.h.bf16 %v710_v63 }
 0x1bd   :  { %v807_v23 = vpop.eup %806  ;;  %v411_v12 = vpop.permute.xlu0 %410 }
 0x1be   :  { %v477_v11 = vmul.f32 %v807_v23, %v972_v29  ;;  %v416_v13 = vpop.permute.xlu1 %415  ;;  %v617_v14 = vmax.f32 %v601_v10, 0.0  ;;  %810 = vrcp.f32 %v411_v12 }
 0x1bf   :  { %812 = vrcp.f32 %v416_v13 }
 0x1c0   :  { %v579_v15 = vsel %vm563_vm6, %v477_v11, %v691_v9  ;;  %633 = vst [vmem:[#allocation8 + $0x40] sm:$0xff] %v617_v14 }
 0x1c1   :  { %v602_v24 = vadd.f32 %v1057_v18, %v579_v15  ;;  %v451_v16 = vpop.permute.xlu0 %450 }
 0x1c2   :  { %v456_v17 = vpop.permute.xlu1 %455  ;;  %814 = vrcp.f32 %v451_v16 }
 0x1c3   :  { %v618_v19 = vmax.f32 %v602_v24, 0.0  ;;  %816 = vrcp.f32 %v456_v17 }
 0x1c4   :  { %v809_v27 = vpop.eup %808 }
 0x1c5   :  { %634 = vst [vmem:[#allocation8 + $0x48] sm:$0xff] %v618_v19  ;;  %v461_v31 = vmul.f32 %v809_v27, %v974_v30  ;;  %v526_v29 = vpop.permute.xlu0 %525 }
 0x1c6   :  { %v529_v32 = vpop.permute.xlu1 %528  ;;  %vm560_vm8 = vcmp.eq.s32.totalorder %v526_v29, 1 }
 0x1c7   :  { %v571_v33 = vsel %vm555_vm7, %v461_v31, %v675_v20  ;;  %vm561_vm9 = vcmp.eq.s32.totalorder %v529_v32, 1 }
 0x1c8   :  { %v811_v39 = vpop.eup %810  ;;  %v594_v44 = vadd.f32 %v1057_v18, %v571_v33 }
 0x1c9   :  { %v813_v46 = vpop.eup %812  ;;  %v471_v47 = vmul.f32 %v811_v39, %v982_v34  ;;  %v401_v22 = vpop.permute.xlu0 %400 }
 0x1ca   :  { %v406_v48 = vpop.permute.xlu1 %405  ;;  %v610_v21 = vmax.f32 %v594_v44, 0.0  ;;  %v473_v30 = vmul.f32 %v813_v46, %v996_v40  ;;  %818 = vrcp.f32 %v401_v22 }
 0x1cb   :  { %v576_v49 = vsel %vm560_vm8, %v471_v47, %v686_v38  ;;  %820 = vrcp.f32 %v406_v48 }
 0x1cc   :  { %626 = vst [vmem:[#allocation8 + $0x8] sm:$0xff] %v610_v21  ;;  %v599_v50 = vadd.f32 %v1057_v18, %v576_v49  ;;  %v577_v51 = vsel %vm561_vm9, %v473_v30, %v687_v45  ;;  %v815_v57 = vpop.eup %814 }
 0x1cd   :  { %v600_v52 = vadd.f32 %v1057_v18, %v577_v51  ;;  %v441_v53 = vpop.permute.xlu0 %440  ;;  %v817_v58 = vpop.eup %816  ;;  %v487_v11 = vmul.f32 %v815_v57, %v984_v35 }
 0x1ce   :  { %v446_v54 = vpop.permute.xlu1 %445  ;;  %v615_v55 = vmax.f32 %v599_v50, 0.0  ;;  %822 = vrcp.f32 %v441_v53  ;;  %v489_v12 = vmul.f32 %v817_v58, %v998_v41 }
 0x1cf   :  { %v616_v34 = vmax.f32 %v600_v52, 0.0  ;;  %824 = vrcp.f32 %v446_v54 }
 0x1d0   :  { %631 = vst [vmem:[#allocation8 + $0x30] sm:$0xff] %v615_v55 }
 0x1d1   :  { %632 = vst [vmem:[#allocation8 + $0x38] sm:$0xff] %v616_v34  ;;  %v520_v40 = vpop.permute.xlu0 %519 }
 0x1d2   :  { %v523_v25 = vpop.permute.xlu1 %522  ;;  %vm558_vm10 = vcmp.eq.s32.totalorder %v520_v40, 1 }
 0x1d3   :  { %vm559_vm11 = vcmp.eq.s32.totalorder %v523_v25, 1 }
 0x1d4   :  { %v819_v61 = vpop.eup %818 }
 0x1d5   :  { %v821_v0 = vpop.eup %820  ;;  %v467_v1 = vmul.f32 %v819_v61, %v986_v36  ;;  %v544_v26 = vpop.permute.xlu0 %543 }
 0x1d6   :  { %v547_v2 = vpop.permute.xlu1 %546  ;;  %v469_v3 = vmul.f32 %v821_v0, %v1001_v42  ;;  %vm566_vm12 = vcmp.eq.s32.totalorder %v544_v26, 1 }
 0x1d7   :  { %v574_v6 = vsel %vm558_vm10, %v467_v1, %v682_v59  ;;  %vm567_vm13 = vcmp.eq.s32.totalorder %v547_v2, 1 }
 0x1d8   :  { %v823_v9 = vpop.eup %822  ;;  %v597_v23 = vadd.f32 %v1057_v18, %v574_v6  ;;  %v575_v10 = vsel %vm559_vm11, %v469_v3, %v683_v62 }
 0x1d9   :  { %v825_v36 = vpop.eup %824  ;;  %v598_v13 = vadd.f32 %v1057_v18, %v575_v10  ;;  %v483_v14 = vmul.f32 %v823_v9, %v988_v37  ;;  %v550_v42 = vpop.permute.xlu0 %549 }
 0x1da   :  { %v553_v15 = vpop.permute.xlu1 %552  ;;  %v613_v24 = vmax.f32 %v597_v23, 0.0  ;;  %v485_v16 = vmul.f32 %v825_v36, %v1003_v43  ;;  %vm568_vm14 = vcmp.eq.s32.totalorder %v550_v42, 1 }
 0x1db   :  { %vm569_vm15 = vcmp.eq.s32.totalorder %v553_v15, 1  ;;  %v614_v17 = vmax.f32 %v598_v13, 0.0  ;;  %v582_v19 = vsel %vm566_vm12, %v483_v14, %v698_v4  ;;  %v584_v20 = vsel %vm568_vm14, %v487_v11, %v702_v7 }
 0x1dc   :  { %v585_v35 = vsel %vm569_vm15, %v489_v12, %v703_v8  ;;  %629 = vst [vmem:[#allocation8 + $0x20] sm:$0xff] %v613_v24  ;;  %v605_v41 = vadd.f32 %v1057_v18, %v582_v19  ;;  %v583_v27 = vsel %vm567_vm13, %v485_v16, %v699_v5  ;;  %v607_v28 = vadd.f32 %v1057_v18, %v584_v20 }
 0x1dd   :  { %v608_v37 = vadd.f32 %v1057_v18, %v585_v35  ;;  %630 = vst [vmem:[#allocation8 + $0x28] sm:$0xff] %v614_v17  ;;  %v606_v31 = vadd.f32 %v1057_v18, %v583_v27 }
 0x1de   :  { %v621_v43 = vmax.f32 %v605_v41, 0.0  ;;  %v623_v29 = vmax.f32 %v607_v28, 0.0 }
 0x1df   :  { %v624_v32 = vmax.f32 %v608_v37, 0.0  ;;  %v622_v33 = vmax.f32 %v606_v31, 0.0 }
 0x1e0   :  { %637 = vst [vmem:[#allocation8 + $0x60] sm:$0xff] %v621_v43  ;;  %639 = vst [vmem:[#allocation8 + $0x70] sm:$0xff] %v623_v29 }
 0x1e1   :  { %640 = vst [vmem:[#allocation8 + $0x78] sm:$0xff] %v624_v32  ;;  %638 = vst [vmem:[#allocation8 + $0x68] sm:$0xff] %v622_v33 }
 0x1e2   :  { %881 = shalt.err (!%p878_p6)
}
 0x1e3   :  { %s882_s17 = scalar_lea.hbm %s1109_s3, 2048 }
 0x1e4   :  { %p883_p7 = scmp.ne.s32.totalorder %s1109_s3, %s882_s17  ;;  %p886_p8 = scmp.lt.u32.totalorder %s882_s17, %s1109_s3 }
 0x1e6   :  { %p888_p9 = pnand %p886_p8, %p883_p7 }
 0x1e8   :  { %891 = shalt.err (!%p888_p9)
}
 0x1e9   :  { %652 = dma.vmem_to_hbm [thread:$0]  %s647_s13, 2048, %s1109_s3, [#allocation5], %s899_s22, %s899_s22, %s900_s23  }
 0x1ea   :  { %896 = dma.done.wait [#allocation5], 2048  }
 0x1eb   :  { %897 = vsyncadd [#allocation5], 4294965248 }
 0x1ec   :  { %656 = vsyncpa [#allocation4], 1 }
 0x1ed   :  { %657 = vsyncpa [#allocation7], 1 }
 0x1ee   :  { %658 = vsyncpa [#allocation5], 1 }

</bundles_post_ra>
